<compile_context>
chip_gen: v7x
topology: tpu7x:2x2x1
jax: 0.10.0
libtpu: 0.0.40
codegen_flags: <defaults>
</compile_context>

<pallas_src>
from functools import reduce

import jax
import jax.numpy as jnp
import numpy as np
from jax.experimental import pallas as pl
from jax.experimental.pallas import tpu as pltpu


def _round_up(x: int, m: int) -> int:
    return ((x + m - 1) // m) * m


# ---------------------------------------------------------------------------
# Kernels
# ---------------------------------------------------------------------------
def _ry_kernel_single_k(xr_ref, xi_ref, op_ref, or_ref, oi_ref):
    """Full-K tile: no accumulator / no branches, write results directly.

    The op tile is loaded into VMEM once and reused by both (real, imag)
    matmuls, so its HBM traffic is amortised over all rows.
    """
    op = op_ref[...]
    or_ref[...] = jnp.dot(
        xr_ref[...], op, preferred_element_type=jnp.float32
    ).astype(or_ref.dtype)
    oi_ref[...] = jnp.dot(
        xi_ref[...], op, preferred_element_type=jnp.float32
    ).astype(oi_ref.dtype)


def _ry_kernel_multi_k(xr_ref, xi_ref, op_ref, or_ref, oi_ref, acc_r, acc_i):
    """K-tiled path (only used when d > 1024): f32 VMEM accumulators."""
    k = pl.program_id(2)

    @pl.when(k == 0)
    def _():
        acc_r[...] = jnp.zeros_like(acc_r)
        acc_i[...] = jnp.zeros_like(acc_i)

    op = op_ref[...]
    acc_r[...] += jnp.dot(xr_ref[...], op, preferred_element_type=jnp.float32)
    acc_i[...] += jnp.dot(xi_ref[...], op, preferred_element_type=jnp.float32)

    @pl.when(k == pl.num_programs(2) - 1)
    def _():
        or_ref[...] = acc_r[...].astype(or_ref.dtype)
        oi_ref[...] = acc_i[...].astype(oi_ref.dtype)


# ---------------------------------------------------------------------------
# Operator construction (plain-JAX glue, fused under the same jit)
# ---------------------------------------------------------------------------
def build_op(params: jax.Array) -> jax.Array:
    """Build the 2^n x 2^n operator from per-qubit RY angles."""
    half = params / 2.0
    c = jnp.cos(half)
    s = jnp.sin(half)
    # (n_qubit, 2, 2) gates: [[c, -s], [s, c]] ; qubit 0 is most significant.
    gates = jnp.stack(
        [jnp.stack([c, -s], axis=-1), jnp.stack([s, c], axis=-1)], axis=-2
    )
    n_qubit = params.shape[0]
    return reduce(jnp.kron, [gates[i] for i in range(n_qubit)])


# ---------------------------------------------------------------------------
# Forward (single fused jit: kron + Pallas matmul)
# ---------------------------------------------------------------------------
@jax.jit
def parallel_ry_complex(x_real: jax.Array, x_imag: jax.Array, params: jax.Array):
    """Pallas-backed forward: returns (x_real @ op, x_imag @ op)."""
    out_dtype = x_real.dtype
    b, d = x_real.shape

    op = build_op(params).astype(out_dtype)

    # --- tile selection -----------------------------------------------------
    # f32 tiles up to 1024 wide: single grid step for d <= 1024, and for
    # d >= 2048 there are automatically >= 2 parallel N tiles (v7x dual-TC).
    TMAX = 1024
    tn = min(d, TMAX)
    tk = min(d, TMAX)

    if b <= 512:
        # Full-extent M block: legal even when b isn't 8-aligned; no padding,
        # no extra HBM pass.
        tm = b
        b_pad = b
    else:
        tm = 256
        b_pad = _round_up(b, tm)

    xr, xi = x_real, x_imag
    if b_pad != b:
        xr = jnp.pad(xr, ((0, b_pad - b), (0, 0)))
        xi = jnp.pad(xi, ((0, b_pad - b), (0, 0)))

    grid_m = b_pad // tm
    grid_n = d // tn
    grid_k = d // tk

    itemsize = jnp.dtype(out_dtype).itemsize
    cost = pl.CostEstimate(
        flops=2 * 2 * b_pad * d * d,                       # two matmuls
        transcendentals=0,
        bytes_accessed=(4 * b_pad * d + d * d) * itemsize,  # xr+xi+or+oi + op
    )

    out_shapes = (
        jax.ShapeDtypeStruct((b_pad, d), out_dtype),
        jax.ShapeDtypeStruct((b_pad, d), out_dtype),
    )

    cparams_kwargs = dict(vmem_limit_bytes=48 * 1024 * 1024)

    if grid_k == 1:
        # Fast path: whole K in one tile -> no accumulator, no branches.
        o_re, o_im = pl.pallas_call(
            _ry_kernel_single_k,
            out_shape=out_shapes,
            grid=(grid_m, grid_n),
            in_specs=[
                pl.BlockSpec((tm, tk), lambda i, j: (i, 0)),  # real rows
                pl.BlockSpec((tm, tk), lambda i, j: (i, 0)),  # imag rows
                pl.BlockSpec((tk, tn), lambda i, j: (0, j)),  # op tile
            ],
            out_specs=(
                pl.BlockSpec((tm, tn), lambda i, j: (i, j)),
                pl.BlockSpec((tm, tn), lambda i, j: (i, j)),
            ),
            compiler_params=pltpu.CompilerParams(
                dimension_semantics=("parallel", "parallel"), **cparams_kwargs
            ),
            cost_estimate=cost,
        )(xr, xi, op)
    else:
        # d > 1024: K-tiled reduction with f32 scratch accumulators.
        o_re, o_im = pl.pallas_call(
            _ry_kernel_multi_k,
            out_shape=out_shapes,
            grid=(grid_m, grid_n, grid_k),
            in_specs=[
                pl.BlockSpec((tm, tk), lambda i, j, k: (i, k)),
                pl.BlockSpec((tm, tk), lambda i, j, k: (i, k)),
                pl.BlockSpec((tk, tn), lambda i, j, k: (k, j)),
            ],
            out_specs=(
                pl.BlockSpec((tm, tn), lambda i, j, k: (i, j)),
                pl.BlockSpec((tm, tn), lambda i, j, k: (i, j)),
            ),
            scratch_shapes=[
                pltpu.VMEM((tm, tn), jnp.float32),
                pltpu.VMEM((tm, tn), jnp.float32),
            ],
            compiler_params=pltpu.CompilerParams(
                dimension_semantics=("parallel", "parallel", "arbitrary"),
                **cparams_kwargs,
            ),
            cost_estimate=cost,
        )(xr, xi, op)

    if b_pad != b:
        o_re = o_re[:b]
        o_im = o_im[:b]
    return o_re, o_im


def reference(x_real, x_imag, params):
    op = build_op(params).astype(x_real.dtype)
    return x_real @ op, x_imag @ op


if __name__ == "__main__":
    key = jax.random.PRNGKey(0)
    k_params, k_re, k_im, k_params2, k_re2, k_im2 = jax.random.split(key, 6)

    # --- config 1: n_qubit=7 (dim=128, lane-aligned), batch=6 -> exercises
    #     the full-extent (non-8-aligned) M block path. ---
    n_qubit = 7
    dim = 2 ** n_qubit
    batch = 6

    params = ((jax.random.uniform(k_params, (n_qubit,)) * 2.0 - 1.0) * np.pi)
    params = params.astype(jnp.float32)
    x_real = jax.random.normal(k_re, (batch, dim), dtype=jnp.float32)
    x_imag = jax.random.normal(k_im, (batch, dim), dtype=jnp.float32)

    out_re, out_im = parallel_ry_complex(x_real, x_imag, params)
    jax.block_until_ready((out_re, out_im))

    ref_re, ref_im = reference(x_real, x_imag, params)
    np.testing.assert_allclose(np.asarray(out_re), np.asarray(ref_re),
                               rtol=1e-5, atol=1e-5)
    np.testing.assert_allclose(np.asarray(out_im), np.asarray(ref_im),
                               rtol=1e-5, atol=1e-5)

    # --- config 2: n_qubit=9 (dim=512) -> still a single grid step with the
    #     enlarged tiles (no K reduction, no accumulator). ---
    n_qubit2 = 9
    dim2 = 2 ** n_qubit2
    batch2 = 4

    params2 = ((jax.random.uniform(k_params2, (n_qubit2,)) * 2.0 - 1.0) * np.pi)
    params2 = params2.astype(jnp.float32)
    x_real2 = jax.random.normal(k_re2, (batch2, dim2), dtype=jnp.float32)
    x_imag2 = jax.random.normal(k_im2, (batch2, dim2), dtype=jnp.float32)

    out_re2, out_im2 = parallel_ry_complex(x_real2, x_imag2, params2)
    jax.block_until_ready((out_re2, out_im2))

    ref_re2, ref_im2 = reference(x_real2, x_imag2, params2)
    np.testing.assert_allclose(np.asarray(out_re2), np.asarray(ref_re2),
                               rtol=1e-5, atol=1e-5)
    np.testing.assert_allclose(np.asarray(out_im2), np.asarray(ref_im2),
                               rtol=1e-5, atol=1e-5)

    print("KERNEL_OK")
</pallas_src>

<mosaic_0001>
module attributes {stable_mosaic.version = 11 : i64} {
  func.func @_ry_kernel_single_k(%arg0: i32, %arg1: i32, %arg2: memref<6x128xf32, #tpu.memory_space<vmem>>, %arg3: memref<6x128xf32, #tpu.memory_space<vmem>>, %arg4: memref<128x128xf32, #tpu.memory_space<vmem>>, %arg5: memref<6x128xf32, #tpu.memory_space<vmem>>, %arg6: memref<6x128xf32, #tpu.memory_space<vmem>>) attributes {dimension_semantics = [#tpu.dimension_semantics<parallel>, #tpu.dimension_semantics<parallel>], iteration_bounds = array<i64: 1, 1>, scalar_prefetch = 0 : i64, scratch_operands = 0 : i64, tpu.core_type = #tpu.core_type<tc>, window_params = [{transform_indices = @transform_0, window_bounds = array<i64: 6, 128>}, {transform_indices = @transform_1, window_bounds = array<i64: 6, 128>}, {transform_indices = @transform_2, window_bounds = array<i64: 128, 128>}, {transform_indices = @transform_3, window_bounds = array<i64: 6, 128>}, {transform_indices = @transform_4, window_bounds = array<i64: 6, 128>}]} {
    %c0 = arith.constant 0 : index
    %c0_0 = arith.constant 0 : index
    %0 = vector.load %arg4[%c0, %c0_0] : memref<128x128xf32, #tpu.memory_space<vmem>>, vector<128x128xf32>
    %c0_1 = arith.constant 0 : index
    %c0_2 = arith.constant 0 : index
    %1 = vector.load %arg2[%c0_1, %c0_2] : memref<6x128xf32, #tpu.memory_space<vmem>>, vector<6x128xf32>
    %cst = arith.constant dense<0.000000e+00> : vector<6x128xf32>
    %2 = tpu.matmul %1, %0, %cst {dimension_numbers = #tpu.dot_dimension_numbers<[1], [0], [0], [1], [0, 0, 1, 1], [], []>} : vector<6x128xf32>, vector<128x128xf32>, vector<6x128xf32> -> vector<6x128xf32>
    %c0_3 = arith.constant 0 : index
    %c0_4 = arith.constant 0 : index
    %3 = vector.load %arg5[%c0_3, %c0_4] : memref<6x128xf32, #tpu.memory_space<vmem>>, vector<6x128xf32>
    tpu.vector_store %arg5[%c0_3, %c0_4], %2 {strides = array<i32>} : memref<6x128xf32, #tpu.memory_space<vmem>>, vector<6x128xf32>,
    %c0_5 = arith.constant 0 : index
    %c0_6 = arith.constant 0 : index
    %4 = vector.load %arg3[%c0_5, %c0_6] : memref<6x128xf32, #tpu.memory_space<vmem>>, vector<6x128xf32>
    %cst_7 = arith.constant dense<0.000000e+00> : vector<6x128xf32>
    %5 = tpu.matmul %4, %0, %cst_7 {dimension_numbers = #tpu.dot_dimension_numbers<[1], [0], [0], [1], [0, 0, 1, 1], [], []>} : vector<6x128xf32>, vector<128x128xf32>, vector<6x128xf32> -> vector<6x128xf32>
    %c0_8 = arith.constant 0 : index
    %c0_9 = arith.constant 0 : index
    %6 = vector.load %arg6[%c0_8, %c0_9] : memref<6x128xf32, #tpu.memory_space<vmem>>, vector<6x128xf32>
    tpu.vector_store %arg6[%c0_8, %c0_9], %5 {strides = array<i32>} : memref<6x128xf32, #tpu.memory_space<vmem>>, vector<6x128xf32>,
    return
  }
  func.func @transform_0(%arg0: i32, %arg1: i32) -> (i32, i32) {
    %c0_i32 = arith.constant 0 : i32
    %c0_i32_0 = arith.constant 0 : i32
    return %arg0, %c0_i32 : i32, i32
  }
  func.func @transform_1(%arg0: i32, %arg1: i32) -> (i32, i32) {
    %c0_i32 = arith.constant 0 : i32
    %c0_i32_0 = arith.constant 0 : i32
    return %arg0, %c0_i32 : i32, i32
  }
  func.func @transform_2(%arg0: i32, %arg1: i32) -> (i32, i32) {
    %c0_i32 = arith.constant 0 : i32
    %c0_i32_0 = arith.constant 0 : i32
    return %c0_i32, %arg1 : i32, i32
  }
  func.func @transform_3(%arg0: i32, %arg1: i32) -> (i32, i32) {
    %c0_i32 = arith.constant 0 : i32
    return %arg0, %arg1 : i32, i32
  }
  func.func @transform_4(%arg0: i32, %arg1: i32) -> (i32, i32) {
    %c0_i32 = arith.constant 0 : i32
    return %arg0, %arg1 : i32, i32
  }
}

</mosaic_0001>

<bundles_post_ra>
// kernel: parallel_ry_complex.1
= control target key start
LH: loop header
LB: loop body
LE: loop exit
PB: predicated region body
PF: predicated region fallthrough
CT: control target
= control target key end

     0   :  { %10 = vsyncpa [#allocation3], 0  ;;  %v411_v3 = vmov 0.0|0.0   ;;  %vm412_vm0 = vmmov 0   ;;  %v413_v6 = vmov 0.0   ;;  %s526_s0 = inlined_call_operand.vmem [shape: f32[6,128], index: 0, kind: input, shape index: {}]   ;;  %s527_s1 = inlined_call_operand.vmem [shape: f32[6,128], index: 1, kind: input, shape index: {}]   ;;  %s528_s2 = inlined_call_operand.vmem [shape: f32[128,128], index: 2, kind: input, shape index: {}]   ;;  %s529_s3 = inlined_call_operand.hbm [shape: f32[6,128], index: 3, kind: output, shape index: {0}]   ;;  %s530_s4 = inlined_call_operand.hbm [shape: f32[6,128], index: 4, kind: output, shape index: {1}]  }
   0x1   :  { %v18_v0 = vld [vmem:[%s528_s2] sm:$0xff]  ;;  %v19_v1 = vld [vmem:[%s528_s2 + $0x8] sm:$0xff]  ;;  %v20_v2 = vld [vmem:[%s528_s2 + $0x10] sm:$0xff]  ;;  %310 = vmatprep.subr.bf16.mxu0 %v411_v3  ;;  %334 = vmatprep.subr.bf16.mxu1 %v411_v3 }
   0x2   :  { %v311_v4 = vpack.c.bf16 %v19_v1, %v18_v0  ;;  %v21_v5 = vld [vmem:[%s528_s2 + $0x18] sm:$0xff]  ;;  %272 = vmatprep.mubr.msk.f32.mxu0 %vm412_vm0, %v413_v6  ;;  %307 = vmatprep.mubr.msk.f32.mxu1 %vm412_vm0, %v413_v6  ;;  %v22_v8 = vld [vmem:[%s528_s2 + $0x20] sm:$0xff]  ;;  %v23_v9 = vld [vmem:[%s528_s2 + $0x28] sm:$0xff] }
   0x3   :  { %v314_v7 = vpack.c.bf16 %v21_v5, %v20_v2 }
   0x4   :  { %312 = vmatpush3.bf16.msra.mxu0 %v311_v4  ;;  %336 = vmatpush3.bf16.msra.mxu1 %v311_v4 }
   0x5   :  { %313 = vmatprep.subr.bf16.mxu0 %v411_v3  ;;  %337 = vmatprep.subr.bf16.mxu1 %v411_v3 }
   0x6   :  { %11 = vsyncpa [#allocation5], 0  ;;  %v317_v10 = vpack.c.bf16 %v23_v9, %v22_v8  ;;  %v24_v11 = vld [vmem:[%s528_s2 + $0x30] sm:$0xff]  ;;  %v25_v12 = vld [vmem:[%s528_s2 + $0x38] sm:$0xff]  ;;  %s414_s25 = smov [#allocation2]  }
   0x7   :  { %v320_v13 = vpack.c.bf16 %v25_v12, %v24_v11  ;;  %v26_v14 = vld [vmem:[%s528_s2 + $0x40] sm:$0xff]  ;;  %v27_v15 = vld [vmem:[%s528_s2 + $0x48] sm:$0xff]  ;;  %v28_v17 = vld [vmem:[%s528_s2 + $0x50] sm:$0xff]  ;;  %s184_s26 = sshll.u32 %s414_s25, 4  ;;  %s185_s26 = int_to_ptr.vmem [resolvable:$true] %s184_s26 }
   0x8   :  { %315 = vmatpush3.bf16.msra.mxu0 %v314_v7  ;;  %339 = vmatpush3.bf16.msra.mxu1 %v314_v7  ;;  %v323_v16 = vpack.c.bf16 %v27_v15, %v26_v14  ;;  %v29_v18 = vld [vmem:[%s528_s2 + $0x58] sm:$0xff]  ;;  %v30_v20 = vld [vmem:[%s528_s2 + $0x60] sm:$0xff]  ;;  %v31_v21 = vld [vmem:[%s528_s2 + $0x68] sm:$0xff]  ;;  %p368_p1 = scmp.lt.s32.totalorder %s185_s26, %s185_s26 }
   0x9   :  { %316 = vmatprep.subr.bf16.mxu0 %v411_v3  ;;  %340 = vmatprep.subr.bf16.mxu1 %v411_v3  ;;  %v326_v19 = vpack.c.bf16 %v29_v18, %v28_v17  ;;  %v329_v22 = vpack.c.bf16 %v31_v21, %v30_v20  ;;  %v32_v23 = vld [vmem:[%s528_s2 + $0x70] sm:$0xff]  ;;  %v33_v24 = vld [vmem:[%s528_s2 + $0x78] sm:$0xff]  ;;  %v34_v26 = vld [vmem:[%s526_s0] sm:$0x3f]  ;;  %s415_s2 = smov [#allocation4]   ;;  %s363_s0 = scalar_lea.vmem %s185_s26, 128 }
   0xa   :  { %v332_v25 = vpack.c.bf16 %v33_v24, %v32_v23  ;;  %v106_v27 = vld [vmem:[%s527_s1] sm:$0x3f]  ;;  %s194_s27 = sshll.u32 %s415_s2, 4  ;;  %p364_p0 = scmp.ne.s32.totalorder %s185_s26, %s363_s0  ;;  %s495_s27 = int_to_ptr.vmem [resolvable:$true] %s194_s27 }
   0xb   :  { %p369_p2 = scmp.lt.s32.totalorder %s363_s0, %s363_s0 }
   0xc   :  { %318 = vmatpush3.bf16.msra.mxu0 %v317_v10  ;;  %342 = vmatpush3.bf16.msra.mxu1 %v317_v10 }
   0xd   :  { %319 = vmatprep.subr.bf16.mxu0 %v411_v3  ;;  %343 = vmatprep.subr.bf16.mxu1 %v411_v3  ;;  %p370_p3 = por %p369_p2, %p368_p1 }
   0xf   :  { %p371_p4 = pnand %p370_p3, %p364_p0 }
  0x10   :  { %321 = vmatpush3.bf16.msra.mxu0 %v320_v13  ;;  %345 = vmatpush3.bf16.msra.mxu1 %v320_v13 }
  0x11   :  { %322 = vmatprep.subr.bf16.mxu0 %v411_v3  ;;  %346 = vmatprep.subr.bf16.mxu1 %v411_v3 }
  0x14   :  { %324 = vmatpush3.bf16.msra.mxu0 %v323_v16  ;;  %348 = vmatpush3.bf16.msra.mxu1 %v323_v16 }
  0x15   :  { %325 = vmatprep.subr.bf16.mxu0 %v411_v3  ;;  %349 = vmatprep.subr.bf16.mxu1 %v411_v3 }
  0x18   :  { %327 = vmatpush3.bf16.msra.mxu0 %v326_v19  ;;  %351 = vmatpush3.bf16.msra.mxu1 %v326_v19 }
  0x19   :  { %328 = vmatprep.subr.bf16.mxu0 %v411_v3  ;;  %352 = vmatprep.subr.bf16.mxu1 %v411_v3 }
  0x1c   :  { %330 = vmatpush3.bf16.msra.mxu0 %v329_v22  ;;  %354 = vmatpush3.bf16.msra.mxu1 %v329_v22 }
  0x1d   :  { %331 = vmatprep.subr.bf16.mxu0 %v411_v3  ;;  %355 = vmatprep.subr.bf16.mxu1 %v411_v3 }
  0x20   :  { %333 = vmatpush3.bf16.msra.mxu0 %v332_v25  ;;  %357 = vmatpush3.bf16.msra.mxu1 %v332_v25 }
  0x23   :  { %273 = vmatmul.mubr.f32.vlgmr.msra.gmra.mrb[0].mxu0 %v34_v26  ;;  %308 = vmatmul.mubr.f32.vlgmr.msra.gmra.mrb[0].mxu1 %v106_v27 }
  0xf6   :  { %v101_v28 = vpop.f32.mrb[0].mxu0  ;;  %v173_v29 = vpop.f32.mrb[0].mxu1 }
  0xf7   :  { %105 = vst [vmem:[#allocation2] sm:$0x3f] %v101_v28  ;;  %177 = vst [vmem:[#allocation4] sm:$0x3f] %v173_v29  ;;  %v274_v30 = vpop.f32.mrb[1].mxu0  ;;  %v309_v31 = vpop.f32.mrb[1].mxu1 }
  0xf8   :  { %374 = shalt.err (!%p371_p4)
}
  0xf9   :  { %s375_s29 = scalar_lea.hbm %s529_s3, 128 }
  0xfa   :  { %p376_p5 = scmp.ne.s32.totalorder %s529_s3, %s375_s29  ;;  %p379_p6 = scmp.lt.u32.totalorder %s375_s29, %s529_s3 }
  0xfc   :  { %p381_p7 = pnand %p379_p6, %p376_p5 }
  0xfe   :  { %384 = shalt.err (!%p381_p7)
}
  0xff   :  { %187 = dma.vmem_to_hbm [thread:$0]  %s185_s26, 128, %s529_s3, [#allocation3]  }
 0x100   :  { %s385_s10 = scalar_lea.vmem %s495_s27, 128  ;;  %p390_p9 = scmp.lt.s32.totalorder %s495_s27, %s495_s27 }
 0x101   :  { %p386_p8 = scmp.ne.s32.totalorder %s495_s27, %s385_s10  ;;  %p391_p10 = scmp.lt.s32.totalorder %s385_s10, %s385_s10 }
 0x103   :  { %p392_p11 = por %p391_p10, %p390_p9 }
 0x105   :  { %p393_p12 = pnand %p392_p11, %p386_p8 }
 0x107   :  { %396 = shalt.err (!%p393_p12)
}
 0x108   :  { %s397_s13 = scalar_lea.hbm %s530_s4, 128 }
 0x109   :  { %p398_p13 = scmp.ne.s32.totalorder %s530_s4, %s397_s13  ;;  %p401_p0 = scmp.lt.u32.totalorder %s397_s13, %s530_s4 }
 0x10b   :  { %p403_p1 = pnand %p401_p0, %p398_p13 }
 0x10d   :  { %406 = shalt.err (!%p403_p1)
}
 0x10e   :  { %197 = dma.vmem_to_hbm [thread:$0]  %s495_s27, 128, %s530_s4, [#allocation5]  }
 0x10f   :  { %407 = dma.done.wait [#allocation3], 128  }
 0x110   :  { %408 = vsyncadd [#allocation3], 4294967168 }
 0x111   :  { %409 = dma.done.wait [#allocation5], 128  }
 0x112   :  { %410 = vsyncadd [#allocation5], 4294967168 }
 0x113   :  { %204 = vsyncpa [#allocation3], 1 }
 0x114   :  { %205 = vsyncpa [#allocation5], 1 }

</bundles_post_ra>
